<compile_context>
chip_gen: v5e
topology: v5e:2x2
jax: 0.10.0
libtpu: 0.0.40
codegen_flags: <defaults>
</compile_context>

<pallas_src>
import math
from functools import partial

import jax
import jax.numpy as jnp
from jax.experimental import pallas as pl
from jax.experimental.pallas import tpu as pltpu


def _gru4rec_kernel(x_ref, item_ref,
                    wih_r_ref, wih_z_ref, wih_n_ref,
                    whh_r_ref, whh_z_ref, whh_n_ref,
                    b_r_ref, b_z_ref, b_in_ref, b_hn_ref,
                    fc1_w_ref, fc1_b_ref, fc2_w_ref, fc2_b_ref,
                    fco_wu_ref, fco_wi_ref, fco_b_ref,
                    pred_ref, h_ref,
                    *, seq_len):
    # x_ref:    (Tc*B, I)  time-chunk of the (time-major, flattened) sequence
    # item_ref: (B, I)
    # w*_r/z/n: per-gate weights, already transposed to (in_features, H)
    # b_r/b_z:  folded biases (b_ih + b_hh) for the r/z gates, (1, H)
    # b_in/b_hn: input/new-gate biases kept separate (b_hn stays inside r*(.))
    # fc1_w: (H, H), fc2_w: (I, H), fco_wu/fco_wi: (H, 2); biases (1, N)
    # pred_ref: (B, 128) int32 lane-dense output block
    # h_ref:    (B, H) f32 VMEM scratch carrying the hidden state across chunks
    c = pl.program_id(0)
    nc = pl.num_programs(0)

    B = item_ref.shape[0]
    H = whh_r_ref.shape[0]
    Tc = x_ref.shape[0] // B
    mm_dtype = whh_r_ref.dtype

    @pl.when(c == 0)
    def _init():
        h_ref[...] = jnp.zeros_like(h_ref)

    # ---- Hoisted input projection: one (Tc*B, I)x(I, H) matmul per gate ----
    x_flat = x_ref[...]                                                  # (Tc*B, I)
    gi_r = jnp.dot(x_flat, wih_r_ref[...],
                   preferred_element_type=jnp.float32) + b_r_ref[...]    # (Tc*B, H)
    gi_z = jnp.dot(x_flat, wih_z_ref[...],
                   preferred_element_type=jnp.float32) + b_z_ref[...]
    gi_n = jnp.dot(x_flat, wih_n_ref[...],
                   preferred_element_type=jnp.float32) + b_in_ref[...]

    whh_r = whh_r_ref[...]
    whh_z = whh_z_ref[...]
    whh_n = whh_n_ref[...]
    b_hn = b_hn_ref[...]

    ragged = (seq_len % Tc) != 0                                         # static

    # ---- Recurrence over the chunk (statically unrolled, static gi slices) ----
    h = h_ref[...]                                                       # (B, H) f32
    for t in range(Tc):
        gh_r = jnp.dot(h.astype(mm_dtype), whh_r, preferred_element_type=jnp.float32)
        gh_z = jnp.dot(h.astype(mm_dtype), whh_z, preferred_element_type=jnp.float32)
        gh_n = jnp.dot(h.astype(mm_dtype), whh_n, preferred_element_type=jnp.float32) + b_hn
        lo = t * B
        r = jax.nn.sigmoid(gi_r[lo:lo + B, :] + gh_r)
        z = jax.nn.sigmoid(gi_z[lo:lo + B, :] + gh_z)
        n = jnp.tanh(gi_n[lo:lo + B, :] + r * gh_n)
        h_new = (1.0 - z) * n + z * h
        if ragged:  # only emitted when the padded tail exists (static condition)
            valid = (c * Tc + t) < seq_len
            h_new = jnp.where(valid, h_new, h)
        h = h_new
    h_ref[...] = h

    # ---- Head: only on the last time chunk ----
    @pl.when(c == nc - 1)
    def _head():
        user = jnp.dot(h.astype(mm_dtype), fc1_w_ref[...],
                       preferred_element_type=jnp.float32) + fc1_b_ref[...]     # (B, H)
        item = jnp.dot(item_ref[...], fc2_w_ref[...],
                       preferred_element_type=jnp.float32) + fc2_b_ref[...]     # (B, H)
        # fc_out(cat([user, item])) == user @ W[:, :H].T + item @ W[:, H:].T + b
        logits = (jnp.dot(user.astype(mm_dtype), fco_wu_ref[...],
                          preferred_element_type=jnp.float32)
                  + jnp.dot(item.astype(mm_dtype), fco_wi_ref[...],
                            preferred_element_type=jnp.float32)
                  + fco_b_ref[...])                                             # (B, 2)
        # softmax is monotone -> argmax(softmax(z)) == argmax(z).  torch.max
        # returns the first maximal index, so class 1 only if strictly greater.
        pred = (logits[:, 1:2] > logits[:, 0:1]).astype(jnp.int32)              # (B, 1)
        pred_ref[...] = jnp.broadcast_to(pred, pred_ref.shape)


def gru4rec_forward(x, item_feat, params, *, time_chunk=16,
                    compute_dtype=jnp.float32):
    """x: (B, S, I) float32, item_feat: (B, I) float32 -> pred: (B,) int32."""
    B, S, I = x.shape
    H = params["fc1_w"].shape[0]
    f32 = jnp.float32

    # Pick a time chunk whose row-block (Tc*B) is 8-sublane aligned (or covers all).
    Tc = max(1, min(int(time_chunk), S))
    if (Tc * B) % 8 != 0:
        Tc *= 8 // math.gcd(Tc * B, 8)
    n_chunks = (S + Tc - 1) // Tc
    S_pad = n_chunks * Tc

    # Time-major, zero-padded, flattened to (S_pad*B, I): each grid step streams
    # one aligned (Tc*B, I) slab from HBM behind the MXU work.
    x_tm = jnp.transpose(x, (1, 0, 2)).astype(f32)
    if S_pad != S:
        x_tm = jnp.pad(x_tm, ((0, S_pad - S), (0, 0), (0, 0)))
    x_2d = x_tm.reshape(S_pad * B, I).astype(compute_dtype)

    w_ih = params["w_ih"].astype(f32)     # (3H, I), PyTorch gate order [r, z, n]
    w_hh = params["w_hh"].astype(f32)     # (3H, H)
    b_ih = params["b_ih"].astype(f32)
    b_hh = params["b_hh"].astype(f32)

    def gate(w, g):                        # per-gate weight, transposed to (in, H)
        return jnp.transpose(w[g * H:(g + 1) * H, :]).astype(compute_dtype)

    args = (
        x_2d,
        item_feat.astype(compute_dtype),                               # (B, I)
        gate(w_ih, 0), gate(w_ih, 1), gate(w_ih, 2),                   # (I, H) x3
        gate(w_hh, 0), gate(w_hh, 1), gate(w_hh, 2),                   # (H, H) x3
        (b_ih[0:H] + b_hh[0:H]).reshape(1, H),                         # r bias (folded)
        (b_ih[H:2 * H] + b_hh[H:2 * H]).reshape(1, H),                 # z bias (folded)
        b_ih[2 * H:3 * H].reshape(1, H),                               # b_in
        b_hh[2 * H:3 * H].reshape(1, H),                               # b_hn
        params["fc1_w"].T.astype(compute_dtype),
        params["fc1_b"].reshape(1, H).astype(f32),
        params["fc2_w"].T.astype(compute_dtype),
        params["fc2_b"].reshape(1, H).astype(f32),
        params["fc_out_w"][:, :H].T.astype(compute_dtype),             # (H, 2) user half
        params["fc_out_w"][:, H:].T.astype(compute_dtype),             # (H, 2) item half
        params["fc_out_b"].reshape(1, 2).astype(f32),
    )

    def resident(a):  # full-array block, kept VMEM-resident across the grid
        return pl.BlockSpec(a.shape, lambda c: (0, 0))

    in_specs = ([pl.BlockSpec((Tc * B, I), lambda c: (c, 0))]
                + [resident(a) for a in args[1:]])

    out = pl.pallas_call(
        partial(_gru4rec_kernel, seq_len=S),
        out_shape=jax.ShapeDtypeStruct((B, 128), jnp.int32),   # lane-dense output
        grid_spec=pltpu.PrefetchScalarGridSpec(
            num_scalar_prefetch=0,
            grid=(n_chunks,),
            in_specs=in_specs,
            out_specs=pl.BlockSpec((B, 128), lambda c: (0, 0)),
            scratch_shapes=[pltpu.VMEM((B, H), jnp.float32)],  # carried hidden state
        ),
        compiler_params=pltpu.CompilerParams(
            dimension_semantics=("arbitrary",),                # recurrent axis is sequential
            vmem_limit_bytes=32 * 1024 * 1024,
        ),
    )(*args)
    return out[:, 0]


def init_params(key, input_size, hidden_size):
    """Deterministic init matching the PyTorch parameter shapes (uniform, like nn.GRU/Linear)."""
    ks = jax.random.split(key, 10)

    def u(k, shape, fan_in):
        bound = 1.0 / math.sqrt(fan_in)
        return jax.random.uniform(k, shape, jnp.float32, -bound, bound)

    H, I = hidden_size, input_size
    return {
        "w_ih": u(ks[0], (3 * H, I), H),
        "w_hh": u(ks[1], (3 * H, H), H),
        "b_ih": u(ks[2], (3 * H,), H),
        "b_hh": u(ks[3], (3 * H,), H),
        "fc1_w": u(ks[4], (H, H), H),
        "fc1_b": u(ks[5], (H,), H),
        "fc2_w": u(ks[6], (H, I), I),
        "fc2_b": u(ks[7], (H,), I),
        "fc_out_w": u(ks[8], (2, 2 * H), 2 * H),
        "fc_out_b": u(ks[9], (2,), 2 * H),
    }


def reference_forward(x, item_feat, p):
    """Pure-JAX reference mirroring PyTorch's GRU + Linear + softmax + argmax."""
    B, S, I = x.shape
    H = p["fc1_w"].shape[0]
    h = jnp.zeros((B, H), jnp.float32)
    for t in range(S):
        xt = x[:, t, :]
        gi = xt @ p["w_ih"].T + p["b_ih"]
        gh = h @ p["w_hh"].T + p["b_hh"]
        r = jax.nn.sigmoid(gi[:, :H] + gh[:, :H])
        z = jax.nn.sigmoid(gi[:, H:2 * H] + gh[:, H:2 * H])
        n = jnp.tanh(gi[:, 2 * H:] + r * gh[:, 2 * H:])
        h = (1.0 - z) * n + z * h
    user = h @ p["fc1_w"].T + p["fc1_b"]
    item = item_feat @ p["fc2_w"].T + p["fc2_b"]
    logits = jnp.concatenate([user, item], axis=1) @ p["fc_out_w"].T + p["fc_out_b"]
    probs = jax.nn.softmax(logits, axis=1)
    return jnp.argmax(probs, axis=1).astype(jnp.int32)


if __name__ == "__main__":
    B, S, I, H = 2, 8, 4, 32  # batch, seq, input_size, hidden_size

    key = jax.random.PRNGKey(0)
    k_param, k_x, k_item = jax.random.split(key, 3)

    params = init_params(k_param, I, H)
    x = jax.random.normal(k_x, (B, S, I), jnp.float32)
    item_feat = jax.random.normal(k_item, (B, I), jnp.float32)

    # time_chunk=4 -> two grid steps: exercises the streamed x pipeline and the
    # VMEM-carried hidden state across chunks.
    pred = gru4rec_forward(x, item_feat, params, time_chunk=4)
    pred = jax.block_until_ready(pred)

    ref = reference_forward(x, item_feat, params)
    assert pred.shape == (B,) and pred.dtype == jnp.int32
    assert bool(jnp.all(pred == ref)), (pred, ref)

    # bf16 matmul path (v6e/v7x): exercise compilation; gate math stays f32.
    pred_bf16 = jax.block_until_ready(
        gru4rec_forward(x, item_feat, params, time_chunk=4,
                        compute_dtype=jnp.bfloat16))
    assert pred_bf16.shape == (B,)

    print("KERNEL_OK")
</pallas_src>

<mosaic_0001>
module attributes {stable_mosaic.version = 11 : i64} {
  func.func @_gru4rec_kernel(%arg0: i32, %arg1: memref<8x4xf32, #tpu.memory_space<vmem>>, %arg2: memref<2x4xf32, #tpu.memory_space<vmem>>, %arg3: memref<4x32xf32, #tpu.memory_space<vmem>>, %arg4: memref<4x32xf32, #tpu.memory_space<vmem>>, %arg5: memref<4x32xf32, #tpu.memory_space<vmem>>, %arg6: memref<32x32xf32, #tpu.memory_space<vmem>>, %arg7: memref<32x32xf32, #tpu.memory_space<vmem>>, %arg8: memref<32x32xf32, #tpu.memory_space<vmem>>, %arg9: memref<1x32xf32, #tpu.memory_space<vmem>>, %arg10: memref<1x32xf32, #tpu.memory_space<vmem>>, %arg11: memref<1x32xf32, #tpu.memory_space<vmem>>, %arg12: memref<1x32xf32, #tpu.memory_space<vmem>>, %arg13: memref<32x32xf32, #tpu.memory_space<vmem>>, %arg14: memref<1x32xf32, #tpu.memory_space<vmem>>, %arg15: memref<4x32xf32, #tpu.memory_space<vmem>>, %arg16: memref<1x32xf32, #tpu.memory_space<vmem>>, %arg17: memref<32x2xf32, #tpu.memory_space<vmem>>, %arg18: memref<32x2xf32, #tpu.memory_space<vmem>>, %arg19: memref<1x2xf32, #tpu.memory_space<vmem>>, %arg20: memref<2x128xi32, #tpu.memory_space<vmem>>, %arg21: memref<2x32xf32, #tpu.memory_space<vmem>>) attributes {dimension_semantics = [#tpu.dimension_semantics<arbitrary>], iteration_bounds = array<i64: 2>, scalar_prefetch = 0 : i64, scratch_operands = 1 : i64, tpu.core_type = #tpu.core_type<tc>, window_params = [{transform_indices = @transform_0, window_bounds = array<i64: 8, 4>}, {pipeline_mode = #tpu.pipeline_mode<synchronous>, transform_indices = @transform_1, window_bounds = array<i64: 2, 4>}, {pipeline_mode = #tpu.pipeline_mode<synchronous>, transform_indices = @transform_2, window_bounds = array<i64: 4, 32>}, {pipeline_mode = #tpu.pipeline_mode<synchronous>, transform_indices = @transform_3, window_bounds = array<i64: 4, 32>}, {pipeline_mode = #tpu.pipeline_mode<synchronous>, transform_indices = @transform_4, window_bounds = array<i64: 4, 32>}, {pipeline_mode = #tpu.pipeline_mode<synchronous>, transform_indices = @transform_5, window_bounds = array<i64: 32, 32>}, {pipeline_mode = #tpu.pipeline_mode<synchronous>, transform_indices = @transform_6, window_bounds = array<i64: 32, 32>}, {pipeline_mode = #tpu.pipeline_mode<synchronous>, transform_indices = @transform_7, window_bounds = array<i64: 32, 32>}, {pipeline_mode = #tpu.pipeline_mode<synchronous>, transform_indices = @transform_8, window_bounds = array<i64: 1, 32>}, {pipeline_mode = #tpu.pipeline_mode<synchronous>, transform_indices = @transform_9, window_bounds = array<i64: 1, 32>}, {pipeline_mode = #tpu.pipeline_mode<synchronous>, transform_indices = @transform_10, window_bounds = array<i64: 1, 32>}, {pipeline_mode = #tpu.pipeline_mode<synchronous>, transform_indices = @transform_11, window_bounds = array<i64: 1, 32>}, {pipeline_mode = #tpu.pipeline_mode<synchronous>, transform_indices = @transform_12, window_bounds = array<i64: 32, 32>}, {pipeline_mode = #tpu.pipeline_mode<synchronous>, transform_indices = @transform_13, window_bounds = array<i64: 1, 32>}, {pipeline_mode = #tpu.pipeline_mode<synchronous>, transform_indices = @transform_14, window_bounds = array<i64: 4, 32>}, {pipeline_mode = #tpu.pipeline_mode<synchronous>, transform_indices = @transform_15, window_bounds = array<i64: 1, 32>}, {pipeline_mode = #tpu.pipeline_mode<synchronous>, transform_indices = @transform_16, window_bounds = array<i64: 32, 2>}, {pipeline_mode = #tpu.pipeline_mode<synchronous>, transform_indices = @transform_17, window_bounds = array<i64: 32, 2>}, {pipeline_mode = #tpu.pipeline_mode<synchronous>, transform_indices = @transform_18, window_bounds = array<i64: 1, 2>}, {pipeline_mode = #tpu.pipeline_mode<synchronous>, transform_indices = @transform_19, window_bounds = array<i64: 2, 128>}]} {
    %c0_i32 = arith.constant 0 : i32
    %0 = arith.cmpi eq, %arg0, %c0_i32 : i32
    %1 = arith.extui %0 : i1 to i32
    %c0_i32_0 = arith.constant 0 : i32
    %2 = arith.cmpi ne, %1, %c0_i32_0 : i32
    scf.if %2 {
      %cst_53 = arith.constant 0.000000e+00 : f32
      %140 = vector.broadcast %cst_53 : f32 to vector<2x32xf32>
      %c0_54 = arith.constant 0 : index
      %c0_55 = arith.constant 0 : index
      %141 = vector.load %arg21[%c0_54, %c0_55] : memref<2x32xf32, #tpu.memory_space<vmem>>, vector<2x32xf32>
      tpu.vector_store %arg21[%c0_54, %c0_55], %140 {strides = array<i32>} : memref<2x32xf32, #tpu.memory_space<vmem>>, vector<2x32xf32>,
    } else {
    }
    %c0 = arith.constant 0 : index
    %c0_1 = arith.constant 0 : index
    %3 = vector.load %arg1[%c0, %c0_1] : memref<8x4xf32, #tpu.memory_space<vmem>>, vector<8x4xf32>
    %c0_2 = arith.constant 0 : index
    %c0_3 = arith.constant 0 : index
    %4 = vector.load %arg3[%c0_2, %c0_3] : memref<4x32xf32, #tpu.memory_space<vmem>>, vector<4x32xf32>
    %cst = arith.constant dense<0.000000e+00> : vector<8x32xf32>
    %5 = tpu.matmul %3, %4, %cst {dimension_numbers = #tpu.dot_dimension_numbers<[1], [0], [0], [1], [0, 0, 1, 1], [], []>} : vector<8x4xf32>, vector<4x32xf32>, vector<8x32xf32> -> vector<8x32xf32>
    %c0_4 = arith.constant 0 : index
    %c0_5 = arith.constant 0 : index
    %6 = vector.load %arg9[%c0_4, %c0_5] : memref<1x32xf32, #tpu.memory_space<vmem>>, vector<1x32xf32>
    %7 = vector.broadcast %6 : vector<1x32xf32> to vector<8x32xf32>
    %8 = arith.addf %5, %7 : vector<8x32xf32>
    %c0_6 = arith.constant 0 : index
    %c0_7 = arith.constant 0 : index
    %9 = vector.load %arg4[%c0_6, %c0_7] : memref<4x32xf32, #tpu.memory_space<vmem>>, vector<4x32xf32>
    %cst_8 = arith.constant dense<0.000000e+00> : vector<8x32xf32>
    %10 = tpu.matmul %3, %9, %cst_8 {dimension_numbers = #tpu.dot_dimension_numbers<[1], [0], [0], [1], [0, 0, 1, 1], [], []>} : vector<8x4xf32>, vector<4x32xf32>, vector<8x32xf32> -> vector<8x32xf32>
    %c0_9 = arith.constant 0 : index
    %c0_10 = arith.constant 0 : index
    %11 = vector.load %arg10[%c0_9, %c0_10] : memref<1x32xf32, #tpu.memory_space<vmem>>, vector<1x32xf32>
    %12 = vector.broadcast %11 : vector<1x32xf32> to vector<8x32xf32>
    %13 = arith.addf %10, %12 : vector<8x32xf32>
    %c0_11 = arith.constant 0 : index
    %c0_12 = arith.constant 0 : index
    %14 = vector.load %arg5[%c0_11, %c0_12] : memref<4x32xf32, #tpu.memory_space<vmem>>, vector<4x32xf32>
    %cst_13 = arith.constant dense<0.000000e+00> : vector<8x32xf32>
    %15 = tpu.matmul %3, %14, %cst_13 {dimension_numbers = #tpu.dot_dimension_numbers<[1], [0], [0], [1], [0, 0, 1, 1], [], []>} : vector<8x4xf32>, vector<4x32xf32>, vector<8x32xf32> -> vector<8x32xf32>
    %c0_14 = arith.constant 0 : index
    %c0_15 = arith.constant 0 : index
    %16 = vector.load %arg11[%c0_14, %c0_15] : memref<1x32xf32, #tpu.memory_space<vmem>>, vector<1x32xf32>
    %17 = vector.broadcast %16 : vector<1x32xf32> to vector<8x32xf32>
    %18 = arith.addf %15, %17 : vector<8x32xf32>
    %c0_16 = arith.constant 0 : index
    %c0_17 = arith.constant 0 : index
    %19 = vector.load %arg6[%c0_16, %c0_17] : memref<32x32xf32, #tpu.memory_space<vmem>>, vector<32x32xf32>
    %c0_18 = arith.constant 0 : index
    %c0_19 = arith.constant 0 : index
    %20 = vector.load %arg7[%c0_18, %c0_19] : memref<32x32xf32, #tpu.memory_space<vmem>>, vector<32x32xf32>
    %c0_20 = arith.constant 0 : index
    %c0_21 = arith.constant 0 : index
    %21 = vector.load %arg8[%c0_20, %c0_21] : memref<32x32xf32, #tpu.memory_space<vmem>>, vector<32x32xf32>
    %c0_22 = arith.constant 0 : index
    %c0_23 = arith.constant 0 : index
    %22 = vector.load %arg12[%c0_22, %c0_23] : memref<1x32xf32, #tpu.memory_space<vmem>>, vector<1x32xf32>
    %c0_24 = arith.constant 0 : index
    %c0_25 = arith.constant 0 : index
    %23 = vector.load %arg21[%c0_24, %c0_25] : memref<2x32xf32, #tpu.memory_space<vmem>>, vector<2x32xf32>
    %cst_26 = arith.constant dense<0.000000e+00> : vector<2x32xf32>
    %24 = tpu.matmul %23, %19, %cst_26 {dimension_numbers = #tpu.dot_dimension_numbers<[1], [0], [0], [1], [0, 0, 1, 1], [], []>} : vector<2x32xf32>, vector<32x32xf32>, vector<2x32xf32> -> vector<2x32xf32>
    %cst_27 = arith.constant dense<0.000000e+00> : vector<2x32xf32>
    %25 = tpu.matmul %23, %20, %cst_27 {dimension_numbers = #tpu.dot_dimension_numbers<[1], [0], [0], [1], [0, 0, 1, 1], [], []>} : vector<2x32xf32>, vector<32x32xf32>, vector<2x32xf32> -> vector<2x32xf32>
    %cst_28 = arith.constant dense<0.000000e+00> : vector<2x32xf32>
    %26 = tpu.matmul %23, %21, %cst_28 {dimension_numbers = #tpu.dot_dimension_numbers<[1], [0], [0], [1], [0, 0, 1, 1], [], []>} : vector<2x32xf32>, vector<32x32xf32>, vector<2x32xf32> -> vector<2x32xf32>
    %27 = vector.broadcast %22 : vector<1x32xf32> to vector<2x32xf32>
    %28 = arith.addf %26, %27 : vector<2x32xf32>
    %29 = vector.extract_strided_slice %8 {offsets = [0, 0], sizes = [2, 32], strides = [1, 1]} : vector<8x32xf32> to vector<2x32xf32>
    %30 = arith.addf %29, %24 : vector<2x32xf32>
    %31 = arith.negf %30 : vector<2x32xf32>
    %32 = math.exp %31 : vector<2x32xf32>
    %cst_29 = arith.constant 1.000000e+00 : f32
    %33 = vector.broadcast %cst_29 : f32 to vector<2x32xf32>
    %34 = arith.addf %33, %32 : vector<2x32xf32>
    %35 = arith.divf %33, %34 : vector<2x32xf32>
    %36 = vector.extract_strided_slice %13 {offsets = [0, 0], sizes = [2, 32], strides = [1, 1]} : vector<8x32xf32> to vector<2x32xf32>
    %37 = arith.addf %36, %25 : vector<2x32xf32>
    %38 = arith.negf %37 : vector<2x32xf32>
    %39 = math.exp %38 : vector<2x32xf32>
    %cst_30 = arith.constant 1.000000e+00 : f32
    %40 = vector.broadcast %cst_30 : f32 to vector<2x32xf32>
    %41 = arith.addf %40, %39 : vector<2x32xf32>
    %42 = arith.divf %40, %41 : vector<2x32xf32>
    %43 = vector.extract_strided_slice %18 {offsets = [0, 0], sizes = [2, 32], strides = [1, 1]} : vector<8x32xf32> to vector<2x32xf32>
    %44 = arith.mulf %35, %28 : vector<2x32xf32>
    %45 = arith.addf %43, %44 : vector<2x32xf32>
    %46 = math.tanh %45 : vector<2x32xf32>
    %cst_31 = arith.constant 1.000000e+00 : f32
    %47 = vector.broadcast %cst_31 : f32 to vector<2x32xf32>
    %48 = arith.subf %47, %42 : vector<2x32xf32>
    %49 = arith.mulf %48, %46 : vector<2x32xf32>
    %50 = arith.mulf %42, %23 : vector<2x32xf32>
    %51 = arith.addf %49, %50 : vector<2x32xf32>
    %cst_32 = arith.constant dense<0.000000e+00> : vector<2x32xf32>
    %52 = tpu.matmul %51, %19, %cst_32 {dimension_numbers = #tpu.dot_dimension_numbers<[1], [0], [0], [1], [0, 0, 1, 1], [], []>} : vector<2x32xf32>, vector<32x32xf32>, vector<2x32xf32> -> vector<2x32xf32>
    %cst_33 = arith.constant dense<0.000000e+00> : vector<2x32xf32>
    %53 = tpu.matmul %51, %20, %cst_33 {dimension_numbers = #tpu.dot_dimension_numbers<[1], [0], [0], [1], [0, 0, 1, 1], [], []>} : vector<2x32xf32>, vector<32x32xf32>, vector<2x32xf32> -> vector<2x32xf32>
    %cst_34 = arith.constant dense<0.000000e+00> : vector<2x32xf32>
    %54 = tpu.matmul %51, %21, %cst_34 {dimension_numbers = #tpu.dot_dimension_numbers<[1], [0], [0], [1], [0, 0, 1, 1], [], []>} : vector<2x32xf32>, vector<32x32xf32>, vector<2x32xf32> -> vector<2x32xf32>
    %55 = vector.broadcast %22 : vector<1x32xf32> to vector<2x32xf32>
    %56 = arith.addf %54, %55 : vector<2x32xf32>
    %57 = vector.extract_strided_slice %8 {offsets = [2, 0], sizes = [2, 32], strides = [1, 1]} : vector<8x32xf32> to vector<2x32xf32>
    %58 = arith.addf %57, %52 : vector<2x32xf32>
    %59 = arith.negf %58 : vector<2x32xf32>
    %60 = math.exp %59 : vector<2x32xf32>
    %cst_35 = arith.constant 1.000000e+00 : f32
    %61 = vector.broadcast %cst_35 : f32 to vector<2x32xf32>
    %62 = arith.addf %61, %60 : vector<2x32xf32>
    %63 = arith.divf %61, %62 : vector<2x32xf32>
    %64 = vector.extract_strided_slice %13 {offsets = [2, 0], sizes = [2, 32], strides = [1, 1]} : vector<8x32xf32> to vector<2x32xf32>
    %65 = arith.addf %64, %53 : vector<2x32xf32>
    %66 = arith.negf %65 : vector<2x32xf32>
    %67 = math.exp %66 : vector<2x32xf32>
    %cst_36 = arith.constant 1.000000e+00 : f32
    %68 = vector.broadcast %cst_36 : f32 to vector<2x32xf32>
    %69 = arith.addf %68, %67 : vector<2x32xf32>
    %70 = arith.divf %68, %69 : vector<2x32xf32>
    %71 = vector.extract_strided_slice %18 {offsets = [2, 0], sizes = [2, 32], strides = [1, 1]} : vector<8x32xf32> to vector<2x32xf32>
    %72 = arith.mulf %63, %56 : vector<2x32xf32>
    %73 = arith.addf %71, %72 : vector<2x32xf32>
    %74 = math.tanh %73 : vector<2x32xf32>
    %cst_37 = arith.constant 1.000000e+00 : f32
    %75 = vector.broadcast %cst_37 : f32 to vector<2x32xf32>
    %76 = arith.subf %75, %70 : vector<2x32xf32>
    %77 = arith.mulf %76, %74 : vector<2x32xf32>
    %78 = arith.mulf %70, %51 : vector<2x32xf32>
    %79 = arith.addf %77, %78 : vector<2x32xf32>
    %cst_38 = arith.constant dense<0.000000e+00> : vector<2x32xf32>
    %80 = tpu.matmul %79, %19, %cst_38 {dimension_numbers = #tpu.dot_dimension_numbers<[1], [0], [0], [1], [0, 0, 1, 1], [], []>} : vector<2x32xf32>, vector<32x32xf32>, vector<2x32xf32> -> vector<2x32xf32>
    %cst_39 = arith.constant dense<0.000000e+00> : vector<2x32xf32>
    %81 = tpu.matmul %79, %20, %cst_39 {dimension_numbers = #tpu.dot_dimension_numbers<[1], [0], [0], [1], [0, 0, 1, 1], [], []>} : vector<2x32xf32>, vector<32x32xf32>, vector<2x32xf32> -> vector<2x32xf32>
    %cst_40 = arith.constant dense<0.000000e+00> : vector<2x32xf32>
    %82 = tpu.matmul %79, %21, %cst_40 {dimension_numbers = #tpu.dot_dimension_numbers<[1], [0], [0], [1], [0, 0, 1, 1], [], []>} : vector<2x32xf32>, vector<32x32xf32>, vector<2x32xf32> -> vector<2x32xf32>
    %83 = vector.broadcast %22 : vector<1x32xf32> to vector<2x32xf32>
    %84 = arith.addf %82, %83 : vector<2x32xf32>
    %85 = vector.extract_strided_slice %8 {offsets = [4, 0], sizes = [2, 32], strides = [1, 1]} : vector<8x32xf32> to vector<2x32xf32>
    %86 = arith.addf %85, %80 : vector<2x32xf32>
    %87 = arith.negf %86 : vector<2x32xf32>
    %88 = math.exp %87 : vector<2x32xf32>
    %cst_41 = arith.constant 1.000000e+00 : f32
    %89 = vector.broadcast %cst_41 : f32 to vector<2x32xf32>
    %90 = arith.addf %89, %88 : vector<2x32xf32>
    %91 = arith.divf %89, %90 : vector<2x32xf32>
    %92 = vector.extract_strided_slice %13 {offsets = [4, 0], sizes = [2, 32], strides = [1, 1]} : vector<8x32xf32> to vector<2x32xf32>
    %93 = arith.addf %92, %81 : vector<2x32xf32>
    %94 = arith.negf %93 : vector<2x32xf32>
    %95 = math.exp %94 : vector<2x32xf32>
    %cst_42 = arith.constant 1.000000e+00 : f32
    %96 = vector.broadcast %cst_42 : f32 to vector<2x32xf32>
    %97 = arith.addf %96, %95 : vector<2x32xf32>
    %98 = arith.divf %96, %97 : vector<2x32xf32>
    %99 = vector.extract_strided_slice %18 {offsets = [4, 0], sizes = [2, 32], strides = [1, 1]} : vector<8x32xf32> to vector<2x32xf32>
    %100 = arith.mulf %91, %84 : vector<2x32xf32>
    %101 = arith.addf %99, %100 : vector<2x32xf32>
    %102 = math.tanh %101 : vector<2x32xf32>
    %cst_43 = arith.constant 1.000000e+00 : f32
    %103 = vector.broadcast %cst_43 : f32 to vector<2x32xf32>
    %104 = arith.subf %103, %98 : vector<2x32xf32>
    %105 = arith.mulf %104, %102 : vector<2x32xf32>
    %106 = arith.mulf %98, %79 : vector<2x32xf32>
    %107 = arith.addf %105, %106 : vector<2x32xf32>
    %cst_44 = arith.constant dense<0.000000e+00> : vector<2x32xf32>
    %108 = tpu.matmul %107, %19, %cst_44 {dimension_numbers = #tpu.dot_dimension_numbers<[1], [0], [0], [1], [0, 0, 1, 1], [], []>} : vector<2x32xf32>, vector<32x32xf32>, vector<2x32xf32> -> vector<2x32xf32>
    %cst_45 = arith.constant dense<0.000000e+00> : vector<2x32xf32>
    %109 = tpu.matmul %107, %20, %cst_45 {dimension_numbers = #tpu.dot_dimension_numbers<[1], [0], [0], [1], [0, 0, 1, 1], [], []>} : vector<2x32xf32>, vector<32x32xf32>, vector<2x32xf32> -> vector<2x32xf32>
    %cst_46 = arith.constant dense<0.000000e+00> : vector<2x32xf32>
    %110 = tpu.matmul %107, %21, %cst_46 {dimension_numbers = #tpu.dot_dimension_numbers<[1], [0], [0], [1], [0, 0, 1, 1], [], []>} : vector<2x32xf32>, vector<32x32xf32>, vector<2x32xf32> -> vector<2x32xf32>
    %111 = vector.broadcast %22 : vector<1x32xf32> to vector<2x32xf32>
    %112 = arith.addf %110, %111 : vector<2x32xf32>
    %113 = vector.extract_strided_slice %8 {offsets = [6, 0], sizes = [2, 32], strides = [1, 1]} : vector<8x32xf32> to vector<2x32xf32>
    %114 = arith.addf %113, %108 : vector<2x32xf32>
    %115 = arith.negf %114 : vector<2x32xf32>
    %116 = math.exp %115 : vector<2x32xf32>
    %cst_47 = arith.constant 1.000000e+00 : f32
    %117 = vector.broadcast %cst_47 : f32 to vector<2x32xf32>
    %118 = arith.addf %117, %116 : vector<2x32xf32>
    %119 = arith.divf %117, %118 : vector<2x32xf32>
    %120 = vector.extract_strided_slice %13 {offsets = [6, 0], sizes = [2, 32], strides = [1, 1]} : vector<8x32xf32> to vector<2x32xf32>
    %121 = arith.addf %120, %109 : vector<2x32xf32>
    %122 = arith.negf %121 : vector<2x32xf32>
    %123 = math.exp %122 : vector<2x32xf32>
    %cst_48 = arith.constant 1.000000e+00 : f32
    %124 = vector.broadcast %cst_48 : f32 to vector<2x32xf32>
    %125 = arith.addf %124, %123 : vector<2x32xf32>
    %126 = arith.divf %124, %125 : vector<2x32xf32>
    %127 = vector.extract_strided_slice %18 {offsets = [6, 0], sizes = [2, 32], strides = [1, 1]} : vector<8x32xf32> to vector<2x32xf32>
    %128 = arith.mulf %119, %112 : vector<2x32xf32>
    %129 = arith.addf %127, %128 : vector<2x32xf32>
    %130 = math.tanh %129 : vector<2x32xf32>
    %cst_49 = arith.constant 1.000000e+00 : f32
    %131 = vector.broadcast %cst_49 : f32 to vector<2x32xf32>
    %132 = arith.subf %131, %126 : vector<2x32xf32>
    %133 = arith.mulf %132, %130 : vector<2x32xf32>
    %134 = arith.mulf %126, %107 : vector<2x32xf32>
    %135 = arith.addf %133, %134 : vector<2x32xf32>
    %c0_50 = arith.constant 0 : index
    %c0_51 = arith.constant 0 : index
    %136 = vector.load %arg21[%c0_50, %c0_51] : memref<2x32xf32, #tpu.memory_space<vmem>>, vector<2x32xf32>
    tpu.vector_store %arg21[%c0_50, %c0_51], %135 {strides = array<i32>} : memref<2x32xf32, #tpu.memory_space<vmem>>, vector<2x32xf32>,
    %c1_i32 = arith.constant 1 : i32
    %137 = arith.cmpi eq, %arg0, %c1_i32 : i32
    %138 = arith.extui %137 : i1 to i32
    %c0_i32_52 = arith.constant 0 : i32
    %139 = arith.cmpi ne, %138, %c0_i32_52 : i32
    scf.if %139 {
      %c0_53 = arith.constant 0 : index
      %c0_54 = arith.constant 0 : index
      %140 = vector.load %arg13[%c0_53, %c0_54] : memref<32x32xf32, #tpu.memory_space<vmem>>, vector<32x32xf32>
      %cst_55 = arith.constant dense<0.000000e+00> : vector<2x32xf32>
      %141 = tpu.matmul %135, %140, %cst_55 {dimension_numbers = #tpu.dot_dimension_numbers<[1], [0], [0], [1], [0, 0, 1, 1], [], []>} : vector<2x32xf32>, vector<32x32xf32>, vector<2x32xf32> -> vector<2x32xf32>
      %c0_56 = arith.constant 0 : index
      %c0_57 = arith.constant 0 : index
      %142 = vector.load %arg14[%c0_56, %c0_57] : memref<1x32xf32, #tpu.memory_space<vmem>>, vector<1x32xf32>
      %143 = vector.broadcast %142 : vector<1x32xf32> to vector<2x32xf32>
      %144 = arith.addf %141, %143 : vector<2x32xf32>
      %c0_58 = arith.constant 0 : index
      %c0_59 = arith.constant 0 : index
      %145 = vector.load %arg2[%c0_58, %c0_59] : memref<2x4xf32, #tpu.memory_space<vmem>>, vector<2x4xf32>
      %c0_60 = arith.constant 0 : index
      %c0_61 = arith.constant 0 : index
      %146 = vector.load %arg15[%c0_60, %c0_61] : memref<4x32xf32, #tpu.memory_space<vmem>>, vector<4x32xf32>
      %cst_62 = arith.constant dense<0.000000e+00> : vector<2x32xf32>
      %147 = tpu.matmul %145, %146, %cst_62 {dimension_numbers = #tpu.dot_dimension_numbers<[1], [0], [0], [1], [0, 0, 1, 1], [], []>} : vector<2x4xf32>, vector<4x32xf32>, vector<2x32xf32> -> vector<2x32xf32>
      %c0_63 = arith.constant 0 : index
      %c0_64 = arith.constant 0 : index
      %148 = vector.load %arg16[%c0_63, %c0_64] : memref<1x32xf32, #tpu.memory_space<vmem>>, vector<1x32xf32>
      %149 = vector.broadcast %148 : vector<1x32xf32> to vector<2x32xf32>
      %150 = arith.addf %147, %149 : vector<2x32xf32>
      %c0_65 = arith.constant 0 : index
      %c0_66 = arith.constant 0 : index
      %151 = vector.load %arg17[%c0_65, %c0_66] : memref<32x2xf32, #tpu.memory_space<vmem>>, vector<32x2xf32>
      %cst_67 = arith.constant dense<0.000000e+00> : vector<2x2xf32>
      %152 = tpu.matmul %144, %151, %cst_67 {dimension_numbers = #tpu.dot_dimension_numbers<[1], [0], [0], [1], [0, 0, 1, 1], [], []>} : vector<2x32xf32>, vector<32x2xf32>, vector<2x2xf32> -> vector<2x2xf32>
      %c0_68 = arith.constant 0 : index
      %c0_69 = arith.constant 0 : index
      %153 = vector.load %arg18[%c0_68, %c0_69] : memref<32x2xf32, #tpu.memory_space<vmem>>, vector<32x2xf32>
      %cst_70 = arith.constant dense<0.000000e+00> : vector<2x2xf32>
      %154 = tpu.matmul %150, %153, %cst_70 {dimension_numbers = #tpu.dot_dimension_numbers<[1], [0], [0], [1], [0, 0, 1, 1], [], []>} : vector<2x32xf32>, vector<32x2xf32>, vector<2x2xf32> -> vector<2x2xf32>
      %155 = arith.addf %152, %154 : vector<2x2xf32>
      %c0_71 = arith.constant 0 : index
      %c0_72 = arith.constant 0 : index
      %156 = vector.load %arg19[%c0_71, %c0_72] : memref<1x2xf32, #tpu.memory_space<vmem>>, vector<1x2xf32>
      %157 = vector.broadcast %156 : vector<1x2xf32> to vector<2x2xf32>
      %158 = arith.addf %155, %157 : vector<2x2xf32>
      %159 = vector.extract_strided_slice %158 {offsets = [0, 1], sizes = [2, 1], strides = [1, 1]} : vector<2x2xf32> to vector<2x1xf32>
      %160 = vector.extract_strided_slice %158 {offsets = [0, 0], sizes = [2, 1], strides = [1, 1]} : vector<2x2xf32> to vector<2x1xf32>
      %161 = arith.cmpf ogt, %159, %160 : vector<2x1xf32>
      %162 = arith.extui %161 : vector<2x1xi1> to vector<2x1xi32>
      %163 = vector.shape_cast %162 : vector<2x1xi32> to vector<2x1xi32>
      %164 = vector.broadcast %163 : vector<2x1xi32> to vector<2x128xi32>
      %c0_73 = arith.constant 0 : index
      %c0_74 = arith.constant 0 : index
      %165 = vector.load %arg20[%c0_73, %c0_74] : memref<2x128xi32, #tpu.memory_space<vmem>>, vector<2x128xi32>
      tpu.vector_store %arg20[%c0_73, %c0_74], %164 {strides = array<i32>} : memref<2x128xi32, #tpu.memory_space<vmem>>, vector<2x128xi32>,
    } else {
    }
    return
  }
  func.func @transform_0(%arg0: i32) -> (i32, i32) {
    %c0_i32 = arith.constant 0 : i32
    %c0_i32_0 = arith.constant 0 : i32
    return %arg0, %c0_i32 : i32, i32
  }
  func.func @transform_1(%arg0: i32) -> (i32, i32) {
    %c0_i32 = arith.constant 0 : i32
    %c0_i32_0 = arith.constant 0 : i32
    %c0_i32_1 = arith.constant 0 : i32
    return %c0_i32, %c0_i32_0 : i32, i32
  }
  func.func @transform_2(%arg0: i32) -> (i32, i32) {
    %c0_i32 = arith.constant 0 : i32
    %c0_i32_0 = arith.constant 0 : i32
    %c0_i32_1 = arith.constant 0 : i32
    return %c0_i32, %c0_i32_0 : i32, i32
  }
  func.func @transform_3(%arg0: i32) -> (i32, i32) {
    %c0_i32 = arith.constant 0 : i32
    %c0_i32_0 = arith.constant 0 : i32
    %c0_i32_1 = arith.constant 0 : i32
    return %c0_i32, %c0_i32_0 : i32, i32
  }
  func.func @transform_4(%arg0: i32) -> (i32, i32) {
    %c0_i32 = arith.constant 0 : i32
    %c0_i32_0 = arith.constant 0 : i32
    %c0_i32_1 = arith.constant 0 : i32
    return %c0_i32, %c0_i32_0 : i32, i32
  }
  func.func @transform_5(%arg0: i32) -> (i32, i32) {
    %c0_i32 = arith.constant 0 : i32
    %c0_i32_0 = arith.constant 0 : i32
    %c0_i32_1 = arith.constant 0 : i32
    return %c0_i32, %c0_i32_0 : i32, i32
  }
  func.func @transform_6(%arg0: i32) -> (i32, i32) {
    %c0_i32 = arith.constant 0 : i32
    %c0_i32_0 = arith.constant 0 : i32
    %c0_i32_1 = arith.constant 0 : i32
    return %c0_i32, %c0_i32_0 : i32, i32
  }
  func.func @transform_7(%arg0: i32) -> (i32, i32) {
    %c0_i32 = arith.constant 0 : i32
    %c0_i32_0 = arith.constant 0 : i32
    %c0_i32_1 = arith.constant 0 : i32
    return %c0_i32, %c0_i32_0 : i32, i32
  }
  func.func @transform_8(%arg0: i32) -> (i32, i32) {
    %c0_i32 = arith.constant 0 : i32
    %c0_i32_0 = arith.constant 0 : i32
    %c0_i32_1 = arith.constant 0 : i32
    return %c0_i32, %c0_i32_0 : i32, i32
  }
  func.func @transform_9(%arg0: i32) -> (i32, i32) {
    %c0_i32 = arith.constant 0 : i32
    %c0_i32_0 = arith.constant 0 : i32
    %c0_i32_1 = arith.constant 0 : i32
    return %c0_i32, %c0_i32_0 : i32, i32
  }
  func.func @transform_10(%arg0: i32) -> (i32, i32) {
    %c0_i32 = arith.constant 0 : i32
    %c0_i32_0 = arith.constant 0 : i32
    %c0_i32_1 = arith.constant 0 : i32
    return %c0_i32, %c0_i32_0 : i32, i32
  }
  func.func @transform_11(%arg0: i32) -> (i32, i32) {
    %c0_i32 = arith.constant 0 : i32
    %c0_i32_0 = arith.constant 0 : i32
    %c0_i32_1 = arith.constant 0 : i32
    return %c0_i32, %c0_i32_0 : i32, i32
  }
  func.func @transform_12(%arg0: i32) -> (i32, i32) {
    %c0_i32 = arith.constant 0 : i32
    %c0_i32_0 = arith.constant 0 : i32
    %c0_i32_1 = arith.constant 0 : i32
    return %c0_i32, %c0_i32_0 : i32, i32
  }
  func.func @transform_13(%arg0: i32) -> (i32, i32) {
    %c0_i32 = arith.constant 0 : i32
    %c0_i32_0 = arith.constant 0 : i32
    %c0_i32_1 = arith.constant 0 : i32
    return %c0_i32, %c0_i32_0 : i32, i32
  }
  func.func @transform_14(%arg0: i32) -> (i32, i32) {
    %c0_i32 = arith.constant 0 : i32
    %c0_i32_0 = arith.constant 0 : i32
    %c0_i32_1 = arith.constant 0 : i32
    return %c0_i32, %c0_i32_0 : i32, i32
  }
  func.func @transform_15(%arg0: i32) -> (i32, i32) {
    %c0_i32 = arith.constant 0 : i32
    %c0_i32_0 = arith.constant 0 : i32
    %c0_i32_1 = arith.constant 0 : i32
    return %c0_i32, %c0_i32_0 : i32, i32
  }
  func.func @transform_16(%arg0: i32) -> (i32, i32) {
    %c0_i32 = arith.constant 0 : i32
    %c0_i32_0 = arith.constant 0 : i32
    %c0_i32_1 = arith.constant 0 : i32
    return %c0_i32, %c0_i32_0 : i32, i32
  }
  func.func @transform_17(%arg0: i32) -> (i32, i32) {
    %c0_i32 = arith.constant 0 : i32
    %c0_i32_0 = arith.constant 0 : i32
    %c0_i32_1 = arith.constant 0 : i32
    return %c0_i32, %c0_i32_0 : i32, i32
  }
  func.func @transform_18(%arg0: i32) -> (i32, i32) {
    %c0_i32 = arith.constant 0 : i32
    %c0_i32_0 = arith.constant 0 : i32
    %c0_i32_1 = arith.constant 0 : i32
    return %c0_i32, %c0_i32_0 : i32, i32
  }
  func.func @transform_19(%arg0: i32) -> (i32, i32) {
    %c0_i32 = arith.constant 0 : i32
    %c0_i32_0 = arith.constant 0 : i32
    %c0_i32_1 = arith.constant 0 : i32
    return %c0_i32, %c0_i32_0 : i32, i32
  }
}

</mosaic_0001>

<bundles_post_ra>
// kernel: tpu_custom_call.1
= control target key start
LH: loop header
LB: loop body
LE: loop exit
PB: predicated region body
PF: predicated region fallthrough
CT: control target
= control target key end

     0   :  { %s1989_s0 = inlined_call_operand.vmem [shape: f32[16,4], index: 0, kind: input, shape index: {}]   ;;  %s1990_s1 = inlined_call_operand.vmem [shape: f32[2,4], index: 1, kind: input, shape index: {}]   ;;  %s1991_s2 = inlined_call_operand.vmem [shape: f32[4,32], index: 2, kind: input, shape index: {}]   ;;  %s1992_s3 = inlined_call_operand.vmem [shape: f32[4,32], index: 3, kind: input, shape index: {}]   ;;  %s1993_s4 = inlined_call_operand.vmem [shape: f32[4,32], index: 4, kind: input, shape index: {}]   ;;  %s1994_s5 = inlined_call_operand.vmem [shape: f32[32,32], index: 5, kind: input, shape index: {}]   ;;  %s1995_s6 = inlined_call_operand.vmem [shape: f32[32,32], index: 6, kind: input, shape index: {}]   ;;  %s1996_s7 = inlined_call_operand.hbm [shape: f32[32,32], index: 7, kind: input, shape index: {}]   ;;  %s1997_s8 = inlined_call_operand.vmem [shape: f32[1,32], index: 8, kind: input, shape index: {}]   ;;  %s1998_s9 = inlined_call_operand.vmem [shape: f32[1,32], index: 9, kind: input, shape index: {}]   ;;  %s1999_s10 = inlined_call_operand.vmem [shape: f32[1,32], index: 10, kind: input, shape index: {}]   ;;  %s2000_s11 = inlined_call_operand.vmem [shape: f32[1,32], index: 11, kind: input, shape index: {}]   ;;  %s2001_s12 = inlined_call_operand.hbm [shape: f32[32,32], index: 12, kind: input, shape index: {}]   ;;  %s2002_s13 = inlined_call_operand.vmem [shape: f32[1,32], index: 13, kind: input, shape index: {}]   ;;  %s2003_s14 = inlined_call_operand.vmem [shape: f32[4,32], index: 14, kind: input, shape index: {}]   ;;  %s2004_s15 = inlined_call_operand.vmem [shape: f32[1,32], index: 15, kind: input, shape index: {}]   ;;  %s2005_s16 = inlined_call_operand.vmem [shape: f32[32,2], index: 16, kind: input, shape index: {}]   ;;  %s2006_s17 = inlined_call_operand.vmem [shape: f32[32,2], index: 17, kind: input, shape index: {}]   ;;  %s2007_s18 = inlined_call_operand.vmem [shape: f32[1,2], index: 18, kind: input, shape index: {}]   ;;  %s2008_s19 = inlined_call_operand.hbm [shape: s32[2,128], index: 19, kind: output, shape index: {}]  }
   0x1   :  { %2009 = sst [smem:[#allocation12_spill]] %s1989_s0 }
   0x2   :  { %2010 = sst [smem:[#allocation13_spill]] %s1990_s1 }
   0x3   :  { %2011 = sst [smem:[#allocation14_spill]] %s1991_s2 }
   0x4   :  { %2012 = sst [smem:[#allocation15_spill]] %s1992_s3 }
   0x5   :  { %24 = vsyncpa [#allocation4], 0 }
   0x6   :  { %25 = vsyncpa [#allocation7], 0 }
   0x7   :  { %26 = vsyncpa [#allocation5], 0  ;;  %s1771_s0 = smov 0  }
   0x8 LB: > { %s491_s21 = sshll.u32 %s1996_s7, 4  ;;  %s1780_s1 = sadd.s32 4294967295, %s1660_s0   ;;  %s1660_s0 = sphi %s1771_s0, %s32_s0   ;;  %s492_s21 = int_to_ptr.hbm [resolvable:$true] %s491_s21 }
   0x9   : > { %p1419_p0 = scmp.ge.s32.totalorder %s1660_s0, 1  ;;  %p462_p1 = scmp.lt.s32.totalorder %s1660_s0, 3 }
   0xa   : > { %p1420_p2 = scmp.ne.s32.totalorder %s1780_s1, 0  ;;  %p1483_p3 = scmp.eq.s32.totalorder %s1780_s1, 0 }
   0xb   : > { %p1786_p4 = pnand %p1419_p0, %p462_p1  ;;  %s1662_s2 = smov [#allocation3]  }
   0xc   : > { %s493_s23 = sshll.u32 %s1662_s2, 4  ;;  %s517_s3 = sshll.u32 %s2001_s12, 4  ;;  %s494_s23 = int_to_ptr.vmem [resolvable:$true] %s493_s23  ;;  %s518_s3 = int_to_ptr.hbm [resolvable:$true] %s517_s3 }
   0xd   : > { %p1476_p5 = pneg %p1786_p4  ;;  %s1663_s26 = smov [#allocation6]  }
   0xe   : > { %s519_s27 = sshll.u32 %s1663_s26, 4  ;;  %s1664_s28 = smov 128   ;;  %s520_s27 = int_to_ptr.vmem [resolvable:$true] %s519_s27 }
   0xf   : > { %p1477_p6 = pnand %p1483_p3, %p1476_p5  ;;  %s1665_s29 = smov 8  }
  0x10   : > { %560 = sbr.rel (%p1786_p4) target bundleno = 1262 (0x4ee), region = 96 }
  0x11   : > { %1479 = dma.hbm_to_vmem [thread:$0]  (!%p1477_p6), %s492_s21, 512, %s494_s23, [#allocation4], %s1664_s28, %s1664_s28, %s1665_s29  }
  0x12   : > { %1482 = dma.hbm_to_vmem [thread:$0]  (!%p1477_p6), %s518_s3, 512, %s520_s27, [#allocation7], %s1664_s28, %s1664_s28, %s1665_s29  }
  0x15   : > { %1647 = dma.done.wait (%p1483_p3), [#allocation4], 512  }
  0x16   : > { %1649 = vsyncadd (%p1483_p3), [#allocation4], 4294966784 }
  0x17   : > { %1651 = dma.done.wait (%p1483_p3), [#allocation7], 512  }
  0x18   : > { %1653 = vsyncadd (%p1483_p3), [#allocation7], 4294966784  ;;  %p616_p7 = scmp.lt.s32.totalorder %s1780_s1, 1  ;;  %s2014_s2 = sld [smem:[#allocation12_spill]] }
  0x1a   : > { %s617_s30 = scalar_select %p616_p7, %s1780_s1, 1 }
  0x1b   : > { %623 = sbr.rel (%p1420_p2) target bundleno = 34 (0x22), region = 108 }
  0x1c   : > { %s1426_s20 = sshll.u32 %s617_s30, 3 }
  0x1e   : > { %s619_s23 = scalar_lea.vmem %s2014_s2, %s1426_s20 }
  0x20   : > { %vm624_vm0 = vcmask 254976   ;;  %v1666_v0 = vmov 0.0  }
  0x21   : > { %625 = vst.msk [vmem:[#allocation2] sm:$0x3] %vm624_vm0, %v1666_v0 }
  0x22 PF: > { %s2015_s3 = sld [smem:[#allocation14_spill]]  ;;  %vm636_vm1 = vcmask 1043456   ;;  %v719_v2 = vld [vmem:[%s1994_s5 + $0x18] sm:$0xff]  ;;  %v626_v3 = vld [vmem:[%s619_s23] sm:$0xff]  ;;  %vm632_vm2 = vcmask 31744   ;;  %v718_v4 = vld [vmem:[%s1994_s5 + $0x10] sm:$0xff] }
  0x23   : > { %746 = vmatpush.msra.mxu3 %v719_v2  ;;  %v723_v5 = vld [vmem:[%s1995_s6 + $0x18] sm:$0xff]  ;;  %v717_v6 = vld [vmem:[%s1994_s5 + $0x8] sm:$0xff]  ;;  %v722_v7 = vld [vmem:[%s1995_s6 + $0x10] sm:$0xff]  ;;  %vm730_vm3 = vcmask 261120   ;;  %p1454_p8 = scmp.ne.s32.totalorder %s1780_s1, 1 }
  0x24   : > { %v716_v9 = vld [vmem:[%s1994_s5] sm:$0xff]  ;;  %v721_v10 = vld [vmem:[%s1995_s6 + $0x8] sm:$0xff]  ;;  %v1856_v15 = vld [vmem:[#allocation3 + $0x10] sm:$0xff]  ;;  %s2017_s22 = sld [smem:[#allocation13_spill]] (!%p1454_p8)  ;;  %s1667_s30 = smov (!%p1454_p8), 1  }
  0x25   : > { %747 = vmatpush.msra.mxu3 %v718_v4  ;;  %v688_v11 = vld [vmem:[%s1993_s4] sm:$0xf]  ;;  %v1862_v16 = vld [vmem:[#allocation3 + $0x8] sm:$0xff] }
  0x26   : > { %v1849_v13 = vld [vmem:[#allocation3 + $0x18] sm:$0xff]  ;;  %1432 = vmatpush.msk.msra.mxu2 %vm636_vm1, %v688_v11  ;;  %v1867_v17 = vld [vmem:[#allocation3] sm:$0xff] }
  0x27   : > { %748 = vmatpush.msra.mxu3 %v717_v6  ;;  %v720_v14 = vld [vmem:[%s1995_s6] sm:$0xff]  ;;  %1433 = vmatmul.msk.f32.vlgmr.msra.gmra.mxu2 %vm632_vm2, %v626_v3 }
  0x28   : > { %v627_v1 = vld [vmem:[%s2015_s3] sm:$0xf]  ;;  %s2016_s3 = sld [smem:[#allocation15_spill]]  ;;  %859 = vmatpush.msrb.mxu2 %v719_v2 }
  0x29   : > { %1428 = vmatpush.msk.msra.mxu0 %vm636_vm1, %v627_v1  ;;  %v1847_v12 = vld [vmem:[#allocation2] sm:$0x3]  ;;  %749 = vmatpush.msra.mxu3 %v716_v9 }
  0x2a   : > { %1429 = vmatmul.msk.f32.vlgmr.msra.gmra.mxu0 %vm632_vm2, %v626_v3  ;;  %1434 = vmatmul.msk.f32.vlgmr.msra.gmra.mxu3 %vm730_vm3, %v1847_v12  ;;  %v1507_v19 = vld [vmem:[%s1998_s9] ss:$0 sm:$0xff] }
  0x2b   : > { %766 = vmatpush.msrb.mxu0 %v723_v5  ;;  %879 = vmatpush.msrb.mxu3 %v723_v5  ;;  %v1506_v21 = vld [vmem:[%s1997_s8] ss:$0 sm:$0xff] }
  0x2c   : > { %860 = vmatpush.msrb.mxu2 %v718_v4  ;;  %v1896_v39 = vld [vmem:[%s2000_s11] ss:$0 sm:$0xff] }
  0x2d   : > { %767 = vmatpush.msrb.mxu0 %v722_v7  ;;  %880 = vmatpush.msrb.mxu3 %v722_v7  ;;  %v1509_v45 = vld [vmem:[%s1999_s10] ss:$0 sm:$0xff] }
  0x2e   : > { %v660_v8 = vld [vmem:[%s2016_s3] sm:$0xf]  ;;  %861 = vmatpush.msrb.mxu2 %v717_v6 }
  0x2f   : > { %1430 = vmatpush.msk.msra.mxu1 %vm636_vm1, %v660_v8  ;;  %768 = vmatpush.msrb.mxu0 %v721_v10 }
  0x30   : > { %1431 = vmatmul.msk.f32.vlgmr.msra.gmra.mxu1 %vm632_vm2, %v626_v3  ;;  %881 = vmatpush.msrb.mxu3 %v721_v10 }
  0x31   : > { %789 = vmatpush.msrb.mxu1 %v1849_v13  ;;  %769 = vmatpush.msrb.mxu0 %v720_v14 }
  0x32   : > { %1435 = vmatmul.msk.f32.vlgmr.msrb.gmra.mxu0 %vm730_vm3, %v1847_v12  ;;  %862 = vmatpush.msrb.mxu2 %v716_v9 }
  0x33   : > { %790 = vmatpush.msrb.mxu1 %v1856_v15  ;;  %899 = vmatpush.msra.mxu0 %v1849_v13 }
  0x34   : > { %882 = vmatpush.msrb.mxu3 %v720_v14  ;;  %1001 = vmatpush.msra.mxu2 %v723_v5 }
  0x35   : > { %791 = vmatpush.msrb.mxu1 %v1862_v16  ;;  %900 = vmatpush.msra.mxu0 %v1856_v15 }
  0x36   : > { %1021 = vmatpush.msra.mxu3 %v1849_v13  ;;  %1002 = vmatpush.msra.mxu2 %v722_v7 }
  0x37   : > { %792 = vmatpush.msrb.mxu1 %v1867_v17  ;;  %901 = vmatpush.msra.mxu0 %v1862_v16 }
  0x38   : > { %1436 = vmatmul.msk.f32.vlgmr.msrb.gmra.mxu1 %vm730_vm3, %v1847_v12  ;;  %1022 = vmatpush.msra.mxu3 %v1856_v15 }
  0x39   : > { %981 = vmatpush.msra.mxu1 %v719_v2  ;;  %902 = vmatpush.msra.mxu0 %v1867_v17 }
  0x3a   : > { %1003 = vmatpush.msra.mxu2 %v721_v10  ;;  %1023 = vmatpush.msra.mxu3 %v1862_v16 }
  0x3b   : > { %982 = vmatpush.msra.mxu1 %v718_v4  ;;  %1103 = vmatpush.msrb.mxu0 %v719_v2 }
  0x3c   : > { %1004 = vmatpush.msra.mxu2 %v720_v14  ;;  %1024 = vmatpush.msra.mxu3 %v1867_v17 }
  0x3d   : > { %983 = vmatpush.msra.mxu1 %v717_v6  ;;  %1104 = vmatpush.msrb.mxu0 %v718_v4 }
  0x3f   : > { %984 = vmatpush.msra.mxu1 %v716_v9  ;;  %1105 = vmatpush.msrb.mxu0 %v717_v6 }
  0x41   : > { %1123 = vmatpush.msrb.mxu1 %v723_v5  ;;  %1106 = vmatpush.msrb.mxu0 %v716_v9 }
  0x43   : > { %1124 = vmatpush.msrb.mxu1 %v722_v7 }
  0x45   : > { %1125 = vmatpush.msrb.mxu1 %v721_v10 }
  0x47   : > { %1126 = vmatpush.msrb.mxu1 %v720_v14 }
  0xa7   : > { %v657_v18 = vpop.f32.mrf.mxu0 }
  0xa8   : > { %v1889_v24 = vadd.f32 %v1506_v21, %v657_v18 }
  0xaa   : > { %v713_v47 = vpop.f32.mrf.mxu2 }
  0xab   : > { %v1902_v52 = vadd.f32 %v1509_v45, %v713_v47 }
  0xad   : > { %v685_v20 = vpop.f32.mrf.mxu1  ;;  %v751_v27 = vpop.f32.mrf.mxu3 }
  0xae   : > { %v1887_v22 = vadd.f32 %v1507_v19, %v685_v20  ;;  %v797_v28 = vadd.f32 %v751_v27, %v1889_v24 }
  0xaf   : > { %v771_v23 = vpop.f32.mrf.mxu0 }
  0xb0   : > { %v817_v25 = vadd.f32 %v771_v23, %v1887_v22  ;;  %v1437_v29 = vmul.f32 -1.442695, %v797_v28 }
  0xb2   : > { %v1438_v26 = vmul.f32 -1.442695, %v817_v25 }
  0xb4   : > { %1510 = vpow2.f32 %v1438_v26 }
  0xb5   : > { %1512 = vpow2.f32 %v1437_v29  ;;  %v794_v41 = vpop.f32.mrf.mxu1 }
  0xb6   : > { %v795_v48 = vadd.f32 %v1896_v39, %v794_v41 }
  0xba   : > { %v1511_v30 = vpop.eup %1510 }
  0xbb   : > { %v821_v31 = vadd.f32 1.0, %v1511_v30  ;;  %v1513_v32 = vpop.eup %1512 }
  0xbc   : > { %v801_v33 = vadd.f32 1.0, %v1513_v32 }
  0xbd   : > { %1514 = vrcp.f32 %v821_v31  ;;  %vm827_vm6 = vweird.f32 %v821_v31  ;;  %v833_v53 = vand.u32 2147483648, %v821_v31  ;;  %v831_v56 = vand.u32 2147483647, %v821_v31 }
  0xbe   : > { %1516 = vrcp.f32 %v801_v33  ;;  %v813_v42 = vand.u32 2147483648, %v801_v33  ;;  %v811_v44 = vand.u32 2147483647, %v801_v33  ;;  %vm807_vm5 = vweird.f32 %v801_v33 }
  0xbf   : > { %v834_v59 = vor.u32 1.1754944e-38, %v833_v53  ;;  %vm832_vm11 = vcmp.eq.f32.partialorder %v831_v56, 8.507059e+37 }
  0xc0   : > { %v814_v50 = vor.u32 1.1754944e-38, %v813_v42  ;;  %vm812_vm9 = vcmp.eq.f32.partialorder %v811_v44, 8.507059e+37 }
  0xc3   : > { %v1515_v34 = vpop.eup %1514 }
  0xc4   : > { %v823_v35 = vmul.f32 %v1515_v34, %v821_v31  ;;  %v1517_v36 = vpop.eup %1516  ;;  %vm828_vm8 = vweird.f32 %v1515_v34 }
  0xc5   : > { %v803_v37 = vmul.f32 %v1517_v36, %v801_v33  ;;  %vm808_vm4 = vweird.f32 %v1517_v36  ;;  %vm829_vm10 = vmor %vm827_vm6, %vm828_vm8 }
  0xc6   : > { %v824_v38 = vsub.f32 1.0, %v823_v35  ;;  %vm809_vm7 = vmor %vm807_vm5, %vm808_vm4 }
  0xc7   : > { %v804_v40 = vsub.f32 1.0, %v803_v37 }
  0xc8   : > { %v825_v46 = vmul.f32 %v1515_v34, %v824_v38 }
  0xc9   : > { %v805_v43 = vmul.f32 %v1517_v36, %v804_v40 }
  0xca   : > { %v826_v55 = vadd.f32 %v1515_v34, %v825_v46 }
  0xcb   : > { %v806_v49 = vadd.f32 %v1517_v36, %v805_v43 }
  0xcc   : > { %v830_v60 = vsel %vm829_vm10, %v1515_v34, %v826_v55 }
  0xcd   : > { %v810_v51 = vsel %vm809_vm7, %v1517_v36, %v806_v49  ;;  %v835_v61 = vsel %vm832_vm11, %v834_v59, %v830_v60 }
  0xce   : > { %v815_v54 = vsel %vm812_vm9, %v814_v50, %v810_v51  ;;  %v840_v62 = vsub.f32 1.0, %v835_v61  ;;  %v842_v1 = vmul.f32 %v835_v61, %v1847_v12 }
  0xcf   : > { %v837_v57 = vmul.f32 %v815_v54, %v795_v48 }
  0xd1   : > { %v838_v58 = vadd.f32 %v837_v57, %v1902_v52 }
  0xd3   : > { %1518 = vtanh.f32 %v838_v58 }
  0xd9   : > { %v1519_v63 = vpop.eup %1518 }
  0xda   : > { %v841_v0 = vmul.f32 %v1519_v63, %v840_v62 }
  0xdc   : > { %v1906_v2 = vadd.f32 %v842_v1, %v841_v0 }
  0xde   : > { %1439 = vmatmul.msk.f32.vlgmr.msrb.gmra.mxu2 %vm730_vm3, %v1906_v2  ;;  %1440 = vmatmul.msk.f32.vlgmr.msrb.gmra.mxu3 %vm730_vm3, %v1906_v2  ;;  %v961_v43 = vrot.slane %v1906_v2, 6 }
  0xdf   : > { %1441 = vmatmul.msk.f32.vlgmr.msra.gmra.mxu0 %vm730_vm3, %v1906_v2  ;;  %1143 = vmatpush.msrb.mxu2 %v1849_v13 }
  0xe1   : > { %1144 = vmatpush.msrb.mxu2 %v1856_v15 }
  0xe3   : > { %1145 = vmatpush.msrb.mxu2 %v1862_v16 }
  0xe5   : > { %1146 = vmatpush.msrb.mxu2 %v1867_v17 }
 0x15c   : > { %v904_v18 = vpop.f32.mrf.mxu0 }
 0x15d   : > { %v905_v25 = vadd.f32 %v1896_v39, %v904_v18 }
 0x15f   : > { %v954_v31 = vrot.slane %v905_v25, 6 }
 0x161   : > { %v864_v3 = vpop.f32.mrf.mxu2  ;;  %v884_v4 = vpop.f32.mrf.mxu3 }
 0x162   : > { %v908_v5 = vrot.slane %v864_v3, 6  ;;  %v931_v6 = vrot.slane %v884_v4, 6 }
 0x164   : > { %v910_v7 = vadd.f32 %v908_v5, %v1889_v24  ;;  %v933_v8 = vadd.f32 %v931_v6, %v1887_v22 }
 0x166   : > { %v1442_v9 = vmul.f32 -1.442695, %v910_v7  ;;  %v1443_v10 = vmul.f32 -1.442695, %v933_v8 }
 0x168   : > { %1520 = vpow2.f32 %v1442_v9 }
 0x169   : > { %1522 = vpow2.f32 %v1443_v10 }
 0x16e   : > { %v1521_v11 = vpop.eup %1520 }
 0x16f   : > { %v1523_v12 = vpop.eup %1522  ;;  %v914_v13 = vadd.f32 1.0, %v1521_v11 }
 0x170   : > { %v937_v14 = vadd.f32 1.0, %v1523_v12 }
 0x171   : > { %1524 = vrcp.f32 %v914_v13  ;;  %v926_v21 = vand.u32 2147483648, %v914_v13  ;;  %v924_v27 = vand.u32 2147483647, %v914_v13  ;;  %vm920_vm13 = vweird.f32 %v914_v13 }
 0x172   : > { %1526 = vrcp.f32 %v937_v14  ;;  %v949_v36 = vand.u32 2147483648, %v937_v14  ;;  %vm943_vm4 = vweird.f32 %v937_v14  ;;  %v947_v37 = vand.u32 2147483647, %v937_v14 }
 0x173   : > { %v927_v30 = vor.u32 1.1754944e-38, %v926_v21  ;;  %vm925_vm15 = vcmp.eq.f32.partialorder %v924_v27, 8.507059e+37 }
 0x174   : > { %v950_v41 = vor.u32 1.1754944e-38, %v949_v36  ;;  %vm948_vm6 = vcmp.eq.f32.partialorder %v947_v37, 8.507059e+37 }
 0x177   : > { %v1525_v15 = vpop.eup %1524 }
 0x178   : > { %v1527_v16 = vpop.eup %1526  ;;  %v916_v17 = vmul.f32 %v1525_v15, %v914_v13  ;;  %vm921_vm12 = vweird.f32 %v1525_v15 }
 0x179   : > { %v939_v19 = vmul.f32 %v1527_v16, %v937_v14  ;;  %vm922_vm14 = vmor %vm920_vm13, %vm921_vm12  ;;  %vm944_vm0 = vweird.f32 %v1527_v16 }
 0x17a   : > { %v917_v20 = vsub.f32 1.0, %v916_v17  ;;  %vm945_vm5 = vmor %vm943_vm4, %vm944_vm0 }
 0x17b   : > { %v940_v23 = vsub.f32 1.0, %v939_v19 }
 0x17c   : > { %v918_v26 = vmul.f32 %v1525_v15, %v917_v20 }
 0x17d   : > { %v941_v28 = vmul.f32 %v1527_v16, %v940_v23 }
 0x17e   : > { %v919_v29 = vadd.f32 %v1525_v15, %v918_v26 }
 0x17f   : > { %v942_v34 = vadd.f32 %v1527_v16, %v941_v28 }
 0x180   : > { %v923_v32 = vsel %vm922_vm14, %v1525_v15, %v919_v29 }
 0x181   : > { %v928_v33 = vsel %vm925_vm15, %v927_v30, %v923_v32  ;;  %v946_v40 = vsel %vm945_vm5, %v1527_v16, %v942_v34 }
 0x182   : > { %v956_v35 = vmul.f32 %v954_v31, %v928_v33  ;;  %v951_v42 = vsel %vm948_vm6, %v950_v41, %v946_v40 }
 0x183   : > { %v959_v44 = vsub.f32 1.0, %v951_v42  ;;  %v963_v47 = vmul.f32 %v961_v43, %v951_v42 }
 0x184   : > { %v957_v38 = vadd.f32 %v956_v35, %v1902_v52 }
 0x186   : > { %1528 = vtanh.f32 %v957_v38 }
 0x18c   : > { %v1529_v45 = vpop.eup %1528 }
 0x18d   : > { %v960_v46 = vmul.f32 %v1529_v45, %v959_v44 }
 0x18f   : > { %v964_v48 = vadd.f32 %v963_v47, %v960_v46 }
 0x191   : > { %v966_v49 = vrot.slane %v964_v48, 2  ;;  %v1083_v26 = vrot.slane %v964_v48, 6 }
 0x193   : > { %1444 = vmatmul.msk.f32.vlgmr.msra.gmra.mxu1 %vm730_vm3, %v966_v49  ;;  %1445 = vmatmul.msk.f32.vlgmr.msra.gmra.mxu2 %vm730_vm3, %v966_v49 }
 0x194   : > { %1446 = vmatmul.msk.f32.vlgmr.msra.gmra.mxu3 %vm730_vm3, %v966_v49 }
 0x210   : > { %v986_v50 = vpop.f32.mrf.mxu1 }
 0x211   : > { %v1030_v51 = vrot.slane %v986_v50, 4 }
 0x213   : > { %v1032_v53 = vadd.f32 %v1030_v51, %v1889_v24 }
 0x215   : > { %v1447_v54 = vmul.f32 -1.442695, %v1032_v53 }
 0x216   : > { %v1006_v55 = vpop.f32.mrf.mxu2 }
 0x217   : > { %1530 = vpow2.f32 %v1447_v54  ;;  %v1053_v56 = vrot.slane %v1006_v55, 4  ;;  %v1026_v1 = vpop.f32.mrf.mxu3 }
 0x218   : > { %v1027_v4 = vadd.f32 %v1896_v39, %v1026_v1 }
 0x219   : > { %v1055_v57 = vadd.f32 %v1053_v56, %v1887_v22 }
 0x21a   : > { %v1076_v13 = vrot.slane %v1027_v4, 4 }
 0x21b   : > { %v1448_v58 = vmul.f32 -1.442695, %v1055_v57 }
 0x21d   : > { %v1531_v59 = vpop.eup %1530  ;;  %1532 = vpow2.f32 %v1448_v58 }
 0x21e   : > { %v1036_v60 = vadd.f32 1.0, %v1531_v59 }
 0x220   : > { %1534 = vrcp.f32 %v1036_v60  ;;  %v1048_v3 = vand.u32 2147483648, %v1036_v60  ;;  %v1046_v6 = vand.u32 2147483647, %v1036_v60  ;;  %vm1042_vm8 = vweird.f32 %v1036_v60 }
 0x222   : > { %v1049_v10 = vor.u32 1.1754944e-38, %v1048_v3  ;;  %vm1047_vm10 = vcmp.eq.f32.partialorder %v1046_v6, 8.507059e+37 }
 0x223   : > { %v1533_v61 = vpop.eup %1532 }
 0x224   : > { %v1059_v62 = vadd.f32 1.0, %v1533_v61 }
 0x226   : > { %v1535_v63 = vpop.eup %1534  ;;  %1536 = vrcp.f32 %v1059_v62  ;;  %v1071_v16 = vand.u32 2147483648, %v1059_v62  ;;  %v1069_v18 = vand.u32 2147483647, %v1059_v62  ;;  %vm1065_vm12 = vweird.f32 %v1059_v62 }
 0x227   : > { %v1038_v0 = vmul.f32 %v1535_v63, %v1036_v60  ;;  %vm1043_vm7 = vweird.f32 %v1535_v63 }
 0x228   : > { %vm1044_vm9 = vmor %vm1042_vm8, %vm1043_vm7  ;;  %v1072_v21 = vor.u32 1.1754944e-38, %v1071_v16  ;;  %vm1070_vm14 = vcmp.eq.f32.partialorder %v1069_v18, 8.507059e+37 }
 0x229   : > { %v1039_v2 = vsub.f32 1.0, %v1038_v0 }
 0x22b   : > { %v1040_v5 = vmul.f32 %v1535_v63, %v1039_v2 }
 0x22c   : > { %v1537_v7 = vpop.eup %1536 }
 0x22d   : > { %v1061_v8 = vmul.f32 %v1537_v7, %v1059_v62  ;;  %v1041_v9 = vadd.f32 %v1535_v63, %v1040_v5  ;;  %vm1066_vm11 = vweird.f32 %v1537_v7 }
 0x22e   : > { %vm1067_vm13 = vmor %vm1065_vm12, %vm1066_vm11 }
 0x22f   : > { %v1062_v11 = vsub.f32 1.0, %v1061_v8  ;;  %v1045_v12 = vsel %vm1044_vm9, %v1535_v63, %v1041_v9 }
 0x230   : > { %v1050_v14 = vsel %vm1047_vm10, %v1049_v10, %v1045_v12  ;;  %vm1209_vm10 = vcmask 261126  }
 0x231   : > { %v1063_v15 = vmul.f32 %v1537_v7, %v1062_v11  ;;  %v1078_v17 = vmul.f32 %v1076_v13, %v1050_v14 }
 0x233   : > { %v1064_v19 = vadd.f32 %v1537_v7, %v1063_v15  ;;  %v1079_v20 = vadd.f32 %v1078_v17, %v1902_v52 }
 0x235   : > { %v1068_v23 = vsel %vm1067_vm13, %v1537_v7, %v1064_v19  ;;  %1538 = vtanh.f32 %v1079_v20 }
 0x236   : > { %v1073_v25 = vsel %vm1070_vm14, %v1072_v21, %v1068_v23 }
 0x237   : > { %v1081_v27 = vsub.f32 1.0, %v1073_v25  ;;  %v1085_v30 = vmul.f32 %v1083_v26, %v1073_v25 }
 0x23b   : > { %v1539_v28 = vpop.eup %1538 }
 0x23c   : > { %v1082_v29 = vmul.f32 %v1539_v28, %v1081_v27 }
 0x23e   : > { %v1086_v31 = vadd.f32 %v1085_v30, %v1082_v29 }
 0x240   : > { %v1088_v32 = vrot.slane %v1086_v31, 4  ;;  %v1205_v5 = vrot.slane %v1086_v31, 6 }
 0x242   : > { %1449 = vmatmul.msk.f32.vlgmr.msrb.gmra.mxu0 %vm730_vm3, %v1088_v32  ;;  %1450 = vmatmul.msk.f32.vlgmr.msrb.gmra.mxu1 %vm730_vm3, %v1088_v32 }
 0x243   : > { %1451 = vmatmul.msk.f32.vlgmr.msrb.gmra.mxu2 %vm730_vm3, %v1088_v32 }
 0x2bf   : > { %v1108_v33 = vpop.f32.mrf.mxu0  ;;  %v1128_v34 = vpop.f32.mrf.mxu1 }
 0x2c0   : > { %v1152_v35 = vrot.slane %v1108_v33, 2  ;;  %v1175_v36 = vrot.slane %v1128_v34, 2 }
 0x2c2   : > { %v1154_v37 = vadd.f32 %v1152_v35, %v1889_v24  ;;  %v1177_v38 = vadd.f32 %v1175_v36, %v1887_v22 }
 0x2c4   : > { %v1452_v40 = vmul.f32 -1.442695, %v1154_v37  ;;  %v1453_v41 = vmul.f32 -1.442695, %v1177_v38 }
 0x2c6   : > { %1540 = vpow2.f32 %v1452_v40  ;;  %v1148_v50 = vpop.f32.mrf.mxu2 }
 0x2c7   : > { %1542 = vpow2.f32 %v1453_v41  ;;  %v1149_v22 = vadd.f32 %v1896_v39, %v1148_v50 }
 0x2c9   : > { %v1198_v60 = vrot.slane %v1149_v22, 2 }
 0x2cc   : > { %v1541_v42 = vpop.eup %1540 }
 0x2cd   : > { %v1543_v43 = vpop.eup %1542  ;;  %v1158_v44 = vadd.f32 1.0, %v1541_v42 }
 0x2ce   : > { %v1181_v45 = vadd.f32 1.0, %v1543_v43 }
 0x2cf   : > { %1544 = vrcp.f32 %v1158_v44  ;;  %v1170_v24 = vand.u32 2147483648, %v1158_v44  ;;  %v1168_v55 = vand.u32 2147483647, %v1158_v44  ;;  %vm1164_vm0 = vweird.f32 %v1158_v44 }
 0x2d0   : > { %1546 = vrcp.f32 %v1181_v45  ;;  %v1193_v63 = vand.u32 2147483648, %v1181_v45  ;;  %vm1187_vm7 = vweird.f32 %v1181_v45  ;;  %v1191_v1 = vand.u32 2147483647, %v1181_v45 }
 0x2d1   : > { %v1171_v58 = vor.u32 1.1754944e-38, %v1170_v24  ;;  %vm1169_vm5 = vcmp.eq.f32.partialorder %v1168_v55, 8.507059e+37 }
 0x2d2   : > { %v1194_v3 = vor.u32 1.1754944e-38, %v1193_v63  ;;  %vm1192_vm9 = vcmp.eq.f32.partialorder %v1191_v1, 8.507059e+37 }
 0x2d5   : > { %v1545_v46 = vpop.eup %1544 }
 0x2d6   : > { %v1547_v47 = vpop.eup %1546  ;;  %v1160_v48 = vmul.f32 %v1545_v46, %v1158_v44  ;;  %vm1165_vm15 = vweird.f32 %v1545_v46 }
 0x2d7   : > { %v1183_v49 = vmul.f32 %v1547_v47, %v1181_v45  ;;  %vm1166_vm4 = vmor %vm1164_vm0, %vm1165_vm15  ;;  %vm1188_vm6 = vweird.f32 %v1547_v47 }
 0x2d8   : > { %v1161_v51 = vsub.f32 1.0, %v1160_v48  ;;  %vm1189_vm8 = vmor %vm1187_vm7, %vm1188_vm6 }
 0x2d9   : > { %v1184_v53 = vsub.f32 1.0, %v1183_v49 }
 0x2da   : > { %v1162_v54 = vmul.f32 %v1545_v46, %v1161_v51 }
 0x2db   : > { %v1185_v56 = vmul.f32 %v1547_v47, %v1184_v53 }
 0x2dc   : > { %v1163_v57 = vadd.f32 %v1545_v46, %v1162_v54 }
 0x2dd   : > { %v1186_v61 = vadd.f32 %v1547_v47, %v1185_v56 }
 0x2de   : > { %v1167_v59 = vsel %vm1166_vm4, %v1545_v46, %v1163_v57 }
 0x2df   : > { %v1172_v62 = vsel %vm1169_vm5, %v1171_v58, %v1167_v59  ;;  %v1190_v2 = vsel %vm1189_vm8, %v1547_v47, %v1186_v61 }
 0x2e0   : > { %v1200_v0 = vmul.f32 %v1198_v60, %v1172_v62  ;;  %v1195_v4 = vsel %vm1192_vm9, %v1194_v3, %v1190_v2 }
 0x2e1   : > { %v1203_v6 = vsub.f32 1.0, %v1195_v4  ;;  %v1207_v9 = vmul.f32 %v1205_v5, %v1195_v4 }
 0x2e2   : > { %v1201_v39 = vadd.f32 %v1200_v0, %v1902_v52 }
 0x2e4   : > { %1548 = vtanh.f32 %v1201_v39 }
 0x2ea   : > { %v1549_v7 = vpop.eup %1548 }
 0x2eb   : > { %v1204_v8 = vmul.f32 %v1549_v7, %v1203_v6  ;;  %1214 = sbr.rel (%p1454_p8) target bundleno = 1257 (0x4e9), region = 112 }
 0x2ed   : > { %v1208_v10 = vadd.f32 %v1207_v9, %v1204_v8 }
 0x2ef   : > { %1210 = vst.msk [vmem:[#allocation2 - $0x6] sm:$0xc0] %vm1209_vm10, %v1208_v10 }
 0x2f0   : > { %v1218_v11 = vld [vmem:[#allocation6 + $0x18] sm:$0xff]  ;;  %v1217_v12 = vld [vmem:[#allocation6 + $0x10] sm:$0xff]  ;;  %v1216_v14 = vld [vmem:[#allocation6 + $0x8] sm:$0xff]  ;;  %v1224_v20 = vrot.slane %v1208_v10, 6  ;;  %v1668_v38 = vmov 1   ;;  %v1669_v41 = vmov 0  }
 0x2f1   : > { %1239 = vmatpush.msra.mxu0 %v1218_v11  ;;  %v1248_v52 = vld [vmem:[%s2003_s14] sm:$0xf]  ;;  %v1286_v15 = vld [vmem:[%s2006_s17 + $0x18] sm:$0xff]  ;;  %v1285_v17 = vld [vmem:[%s2006_s17 + $0x10] sm:$0xff]  ;;  %1550 = vset.pattern.permute.xlu0 %v1668_v38 }
 0x2f2   : > { %v1247_v13 = vld [vmem:[%s2017_s22] sm:$0x3]  ;;  %1456 = vmatpush.msk.msra.mxu1 %vm636_vm1, %v1248_v52  ;;  %v1282_v16 = vld [vmem:[%s2005_s16 + $0x18] sm:$0xff]  ;;  %v1281_v18 = vld [vmem:[%s2005_s16 + $0x10] sm:$0xff]  ;;  %1302 = vmatpush.msra.mxu2 %v1286_v15 }
 0x2f3   : > { %1240 = vmatpush.msra.mxu0 %v1217_v12  ;;  %1457 = vmatmul.msk.f32.vlgmr.msra.gmra.mxu1 %vm632_vm2, %v1247_v13  ;;  %v1215_v19 = vld [vmem:[#allocation6] sm:$0xff]  ;;  %v1552_v27 = vld [vmem:[%s2004_s15] ss:$0 sm:$0xff] }
 0x2f4   : > { %1325 = vmatpush.msra.mxu3 %v1282_v16  ;;  %1303 = vmatpush.msra.mxu2 %v1285_v17  ;;  %v1284_v21 = vld [vmem:[%s2006_s17 + $0x8] sm:$0xff]  ;;  %v1283_v25 = vld [vmem:[%s2006_s17] sm:$0xff] }
 0x2f5   : > { %1241 = vmatpush.msra.mxu0 %v1216_v14  ;;  %v1280_v23 = vld [vmem:[%s2005_s16 + $0x8] sm:$0xff]  ;;  %v1279_v26 = vld [vmem:[%s2005_s16] sm:$0xff] }
 0x2f6   : > { %1326 = vmatpush.msra.mxu3 %v1281_v18  ;;  %1304 = vmatpush.msra.mxu2 %v1284_v21  ;;  %v1551_v30 = vld [vmem:[%s2002_s13] ss:$0 sm:$0xff] }
 0x2f7   : > { %1242 = vmatpush.msra.mxu0 %v1215_v19  ;;  %v1553_v34 = vld [vmem:[%s2007_s18] ss:$0 sm:$0xff] }
 0x2f8   : > { %1455 = vmatmul.msk.f32.vlgmr.msra.gmra.mxu0 %vm730_vm3, %v1224_v20  ;;  %1327 = vmatpush.msra.mxu3 %v1280_v23 }
 0x2f9   : > { %1305 = vmatpush.msra.mxu2 %v1283_v25 }
 0x2fa   : > { %1328 = vmatpush.msra.mxu3 %v1279_v26 }
 0x370   : > { %v1276_v28 = vpop.f32.mrf.mxu1 }
 0x371   : > { %v1277_v29 = vadd.f32 %v1552_v27, %v1276_v28 }
 0x373   : > { %1458 = vmatmul.msk.f32.vlgmr.msra.gmra.mxu2 %vm730_vm3, %v1277_v29 }
 0x375   : > { %v1244_v31 = vpop.f32.mrf.mxu0 }
 0x376   : > { %v1245_v32 = vadd.f32 %v1551_v30, %v1244_v31 }
 0x378   : > { %1459 = vmatmul.msk.f32.vlgmr.msra.gmra.mxu3 %vm730_vm3, %v1245_v32 }
 0x3f6   : > { %v1307_v33 = vpop.f32.mrf.mxu2 }
 0x3fb   : > { %v1330_v35 = vpop.f32.mrf.mxu3 }
 0x3fc   : > { %v1331_v36 = vadd.f32 %v1330_v35, %v1307_v33 }
 0x3fe   : > { %v1337_v37 = vadd.f32 %v1553_v34, %v1331_v36 }
 0x400   : > { %1339 = vrot.lane.b32.xlu0 %v1337_v37, %s1667_s30 }
 0x472   : > { %v1340_v40 = vpop.permute.xlu0 %1339 }
 0x473   : > { %vm1342_vm1 = vcmp.gt.f32.partialorder %v1337_v37, %v1340_v40 }
 0x474   : > { %v1343_v42 = vsel %vm1342_vm1, 1, %v1669_v41 }
 0x475   : > { %1345 = vperm.xlu0 %1550, %v1343_v42  }
 0x4e7   : > { %v1346_v43 = vpop.permute.xlu0 %1345 }
 0x4e8   : > { %1347 = vst [vmem:[#allocation8] sm:$0x3] %v1346_v43 }
 0x4e9 PF: > { %p1487_p9 = scmp.eq.s32.totalorder %s1780_s1, 1  ;;  %s1670_s20 = smov [#allocation8]  }
 0x4ea   : > { %s1354_s21 = sshll.u32 %s1670_s20, 4  ;;  %s1356_s23 = sshll.u32 %s2008_s19, 4  ;;  %s1355_s21 = int_to_ptr.vmem [resolvable:$true] %s1354_s21  ;;  %s1357_s23 = int_to_ptr.hbm [resolvable:$true] %s1356_s23 }
 0x4eb   : > { %1473 = dma.vmem_to_hbm [thread:$0]  (%p1487_p9), %s1355_s21, 32, %s1357_s23, [#allocation5]  }
 0x4ec   : > { %1655 = dma.done.wait (%p1487_p9), [#allocation5], 32  }
 0x4ed   : > { %1657 = vsyncadd (%p1487_p9), [#allocation5], 4294967264 }
 0x4ee PF: > { %s32_s0 = sadd.s32 1, %s1660_s0  }
 0x4ef   : > { %p29_p10 = scmp.ge.s32.totalorder %s32_s0, 4  }
 0x4f1   :  { %31 = sbr.rel (!%p29_p10) target bundleno = 8 (0x8), region = 140 }
 0x4f6   :  { %1370 = vsyncpa [#allocation4], 1 }
 0x4f7   :  { %1372 = vsyncpa [#allocation4 + $0x1], 1 }
 0x4f8   :  { %1373 = vsyncpa [#allocation7], 1 }
 0x4f9   :  { %1374 = vsyncpa [#allocation5], 1 }
 0x4fa   :  { %1376 = vsyncpa [#allocation5 + $0x1], 1 }

</bundles_post_ra>
